<compile_context>
chip_gen: v6e
topology: v6e:2x2x1
jax: 0.10.0
libtpu: 0.0.40
codegen_flags: <defaults>
</compile_context>

<pallas_src>
import itertools
import functools

import numpy as np
import jax
import jax.numpy as jnp
from jax.experimental import pallas as pl
from jax.experimental.pallas import tpu as pltpu


_VMEM_LIMIT = 32 * 1024 * 1024


# ----------------------------------------------------------------------------
# Deterministic parameter / constant setup (matches the PyTorch module __init__)
# ----------------------------------------------------------------------------
def quality_to_factor(quality):
    if quality < 50:
        quality = 5000.0 / quality
    else:
        quality = 200.0 - quality * 2
    return quality / 100.0


def _block_diag2(m):
    out = np.zeros((128, 128), dtype=np.float32)
    out[:64, :64] = m
    out[64:, 64:] = m
    return out


@functools.lru_cache(maxsize=None)
def _jpeg_constants(quality=80.0):
    factor = np.float32(quality_to_factor(quality))

    y_table = np.array(
        [[16, 11, 10, 16, 24, 40, 51, 61],
         [12, 12, 14, 19, 26, 58, 60, 55],
         [14, 13, 16, 24, 40, 57, 69, 56],
         [14, 17, 22, 29, 51, 87, 80, 62],
         [18, 22, 37, 56, 68, 109, 103, 77],
         [24, 35, 55, 64, 81, 104, 113, 92],
         [49, 64, 78, 87, 103, 121, 120, 101],
         [72, 92, 95, 98, 112, 100, 103, 99]], dtype=np.float32).T

    c_table = np.full((8, 8), 99.0, dtype=np.float32)
    c_table[:4, :4] = np.array(
        [[17, 18, 24, 47], [18, 21, 26, 66],
         [24, 26, 56, 99], [47, 66, 99, 99]], dtype=np.float32).T

    dct_t = np.zeros((8, 8, 8, 8), dtype=np.float32)
    idct_t = np.zeros((8, 8, 8, 8), dtype=np.float32)
    for x, y, u, v in itertools.product(range(8), repeat=4):
        dct_t[x, y, u, v] = (np.cos((2 * x + 1) * u * np.pi / 16) *
                             np.cos((2 * y + 1) * v * np.pi / 16))
        idct_t[x, y, u, v] = (np.cos((2 * u + 1) * x * np.pi / 16) *
                              np.cos((2 * v + 1) * y * np.pi / 16))
    alpha = np.array([1.0 / np.sqrt(2)] + [1.0] * 7, dtype=np.float32)
    dct_scale = (np.outer(alpha, alpha) * 0.25).astype(np.float32).reshape(64)
    idct_alpha = np.outer(alpha, alpha).astype(np.float32).reshape(64)

    D = dct_t.reshape(64, 64)     # spatial (8x+y) -> frequency (8u+v)
    T = idct_t.reshape(64, 64)    # frequency (8u+v) -> spatial (8x+y)

    consts = {}
    for name, qt8 in (("y", y_table * factor), ("c", c_table * factor)):
        qt = qt8.reshape(64).astype(np.float32)
        # Fold DCT scale + quantization divide into the DCT basis (column scale):
        #   q_pre = (x - 128) @ D_fold
        d_fold = (D * (dct_scale / qt)[None, :]).astype(np.float32)
        # Fold dequantize * alpha * 0.25 into the IDCT basis (row scale):
        #   pixels = q @ T_fold + 128
        t_fold = ((qt * idct_alpha * 0.25)[:, None] * T).astype(np.float32)
        consts[name] = (jnp.asarray(_block_diag2(d_fold)),
                        jnp.asarray(_block_diag2(t_fold)))
    return consts


# ----------------------------------------------------------------------------
# Pallas kernels
# ----------------------------------------------------------------------------
def _rgb2ycbcr_kernel(x_ref, y_ref, cb_ref, cr_ref):
    # x_ref block: (1, 3, TH, W); outputs: (1, TH, W) each.
    r = x_ref[0, 0] * 255.0
    g = x_ref[0, 1] * 255.0
    b = x_ref[0, 2] * 255.0
    y_ref[0] = 0.299 * r + 0.587 * g + 0.114 * b
    cb_ref[0] = -0.168736 * r - 0.331264 * g + 0.5 * b + 128.0
    cr_ref[0] = 0.5 * r - 0.418688 * g - 0.081312 * b + 128.0


def _ycbcr2rgb_kernel(y_ref, cb_ref, cr_ref, o_ref):
    # y/cb/cr blocks: (1, TH, W); output block: (1, 3, TH, W).
    y = y_ref[0]
    cb = cb_ref[0] - 128.0
    cr = cr_ref[0] - 128.0
    r = y + 1.402 * cr
    g = y - 0.344136 * cb - 0.714136 * cr
    b = y + 1.772 * cb
    o_ref[0, 0] = jnp.clip(r, 0.0, 255.0) * (1.0 / 255.0)
    o_ref[0, 1] = jnp.clip(g, 0.0, 255.0) * (1.0 / 255.0)
    o_ref[0, 2] = jnp.clip(b, 0.0, 255.0) * (1.0 / 255.0)


def _jpeg_block_kernel(x_ref, d_ref, t_ref, o_ref):
    # Fused compress+decompress on packed blocks (two 8x8 blocks per 128-wide row):
    #   (pixels - 128) @ D'  -> DCT + scale + quantize  (one MXU matmul)
    #   diff_round
    #   q @ T' + 128         -> dequant + alpha + 0.25 + IDCT (one MXU matmul)
    q = jnp.dot(x_ref[...] - 128.0, d_ref[...], preferred_element_type=jnp.float32)
    qr = jnp.round(q)
    q = qr + (q - qr) ** 3                                   # diff_round
    o_ref[...] = jnp.dot(q, t_ref[...], preferred_element_type=jnp.float32) + 128.0


# ----------------------------------------------------------------------------
# Tiling helpers
# ----------------------------------------------------------------------------
def _round_up(x, m):
    return (x + m - 1) // m * m


def _row_tile(h, w, target_bytes=2 * 1024 * 1024):
    """Largest multiple-of-8 divisor of h whose (3, th, w) f32 strip <= target."""
    best = 8
    for th in range(8, h + 1, 8):
        if h % th == 0 and 3 * th * w * 4 <= target_bytes:
            best = th
    return best


def _pick_block_tile(n, target=2048):
    """Row tile (multiple of 8) for the packed (n, 128) block array + padded n."""
    if n <= target:
        t = _round_up(max(n, 1), 8)
        return t, t
    for cand in range(target, target // 2 - 1, -8):
        if n % cand == 0:
            return cand, n
    return target, _round_up(n, target)


# ----------------------------------------------------------------------------
# Pallas wrappers
# ----------------------------------------------------------------------------
def _rgb_to_ycbcr(x):
    B, _, H, W = x.shape
    th = _row_tile(H, W)
    plane = jax.ShapeDtypeStruct((B, H, W), jnp.float32)
    return pl.pallas_call(
        _rgb2ycbcr_kernel,
        out_shape=(plane, plane, plane),
        grid=(B, H // th),
        in_specs=[pl.BlockSpec((1, 3, th, W), lambda b, r: (b, 0, r, 0))],
        out_specs=(pl.BlockSpec((1, th, W), lambda b, r: (b, r, 0)),) * 3,
        compiler_params=pltpu.CompilerParams(
            dimension_semantics=("parallel", "parallel"),
            vmem_limit_bytes=_VMEM_LIMIT),
    )(x)


def _ycbcr_to_rgb(y, cb, cr):
    B, H, W = y.shape
    th = _row_tile(H, W)
    pspec = pl.BlockSpec((1, th, W), lambda b, r: (b, r, 0))
    return pl.pallas_call(
        _ycbcr2rgb_kernel,
        out_shape=jax.ShapeDtypeStruct((B, 3, H, W), jnp.float32),
        grid=(B, H // th),
        in_specs=[pspec, pspec, pspec],
        out_specs=pl.BlockSpec((1, 3, th, W), lambda b, r: (b, 0, r, 0)),
        compiler_params=pltpu.CompilerParams(
            dimension_semantics=("parallel", "parallel"),
            vmem_limit_bytes=_VMEM_LIMIT),
    )(y, cb, cr)


def _jpeg_roundtrip_blocks(packed, d2, t2):
    """packed: (N, 128) f32, two 8x8 blocks per row."""
    n = packed.shape[0]
    tile, n_pad = _pick_block_tile(n)
    if n_pad != n:
        packed = jnp.pad(packed, ((0, n_pad - n), (0, 0)))
    out = pl.pallas_call(
        _jpeg_block_kernel,
        out_shape=jax.ShapeDtypeStruct((n_pad, 128), jnp.float32),
        grid=(n_pad // tile,),
        in_specs=[pl.BlockSpec((tile, 128), lambda i: (i, 0)),
                  pl.BlockSpec((128, 128), lambda i: (0, 0)),
                  pl.BlockSpec((128, 128), lambda i: (0, 0))],
        out_specs=pl.BlockSpec((tile, 128), lambda i: (i, 0)),
        compiler_params=pltpu.CompilerParams(
            dimension_semantics=("parallel",),
            vmem_limit_bytes=_VMEM_LIMIT),
    )(packed, d2, t2)
    return out[:n] if n_pad != n else out


# ----------------------------------------------------------------------------
# Plain-JAX glue (block split/merge to the packed layout, chroma resampling)
# ----------------------------------------------------------------------------
# TODO(synk): the 8x8 block split/merge transposes and the 2x chroma
# subsample/upsample remain plain-XLA relayout passes; fusing them into a single
# strip-wise Pallas kernel needs in-kernel reshapes/transposes that are riskier
# to lower, so they are intentionally left outside the kernels.
def _blocks_packed(plane):
    """(P, H, W) -> (P*H*W/128, 128): 8x8 blocks in scan order, two per row."""
    P, H, W = plane.shape
    x = plane.reshape(P, H // 8, 8, W // 8, 8)
    x = jnp.transpose(x, (0, 1, 3, 2, 4))            # (P, nh, nw, 8, 8)
    return x.reshape(-1, 128)


def _unblocks_packed(packed, P, H, W):
    x = packed.reshape(P, H // 8, W // 8, 8, 8)
    x = jnp.transpose(x, (0, 1, 3, 2, 4))
    return x.reshape(P, H, W)


def _chroma_subsample(x):            # 2x2 average pool (even dims by construction)
    B, H, W = x.shape
    return x.reshape(B, H // 2, 2, W // 2, 2).mean(axis=(2, 4))


def _chroma_upsample(x):             # nearest-neighbor x2
    return jnp.repeat(jnp.repeat(x, 2, axis=1), 2, axis=2)


# ----------------------------------------------------------------------------
# DiffJPEG forward
# ----------------------------------------------------------------------------
def diff_jpeg(x, dataset=None, quality=80.0):
    """x: NCHW (B, 3, H, W) float32 in [0, 1]; returns NCHW (B, 3, H, W) in [0, 1]."""
    # TODO(synk): the reference decompress_jpeg takes a `dataset` argument whose
    # source is unavailable; it is accepted and ignored here.
    consts = _jpeg_constants(float(quality))
    x = x.astype(jnp.float32)
    B, C, H, W = x.shape
    if C != 3 or H % 16 != 0 or W % 16 != 0:
        raise ValueError("DiffJPEG expects (B, 3, H, W) with H, W multiples of 16")

    # ---- compress: color transform + chroma subsample ----
    y, cb, cr = _rgb_to_ycbcr(x)
    c = jnp.concatenate([_chroma_subsample(cb), _chroma_subsample(cr)], axis=0)

    # ---- fused DCT -> quantize -> diff_round -> dequantize -> IDCT ----
    d_y, t_y = consts["y"]
    d_c, t_c = consts["c"]
    y_rec = _unblocks_packed(
        _jpeg_roundtrip_blocks(_blocks_packed(y), d_y, t_y), B, H, W)
    c_rec = _unblocks_packed(
        _jpeg_roundtrip_blocks(_blocks_packed(c), d_c, t_c), 2 * B, H // 2, W // 2)

    # ---- decompress tail: chroma upsample + color transform + clamp/255 ----
    cb_rec = _chroma_upsample(c_rec[:B])
    cr_rec = _chroma_upsample(c_rec[B:])
    return _ycbcr_to_rgb(y_rec, cb_rec, cr_rec)


# ----------------------------------------------------------------------------
# Demo
# ----------------------------------------------------------------------------
if __name__ == "__main__":
    key = jax.random.PRNGKey(0)
    B, C, H, W = 2, 3, 16, 16          # H, W multiples of 16 (8x8 blocks + 2x chroma)
    x = jax.random.uniform(key, (B, C, H, W), dtype=jnp.float32)

    out = jax.jit(diff_jpeg)(x, None)
    out = jax.block_until_ready(out)

    assert out.shape == (B, C, H, W), out.shape
    assert out.dtype == jnp.float32
    assert bool(jnp.all(jnp.isfinite(out)))
    assert bool(jnp.all((out >= 0.0) & (out <= 1.0)))
    print("KERNEL_OK")
</pallas_src>

<mosaic_0001>
module attributes {stable_mosaic.version = 11 : i64} {
  func.func @_rgb2ycbcr_kernel(%arg0: i32, %arg1: i32, %arg2: memref<1x3x16x16xf32, #tpu.memory_space<vmem>>, %arg3: memref<1x16x16xf32, #tpu.memory_space<vmem>>, %arg4: memref<1x16x16xf32, #tpu.memory_space<vmem>>, %arg5: memref<1x16x16xf32, #tpu.memory_space<vmem>>) attributes {dimension_semantics = [#tpu.dimension_semantics<parallel>, #tpu.dimension_semantics<parallel>], iteration_bounds = array<i64: 2, 1>, scalar_prefetch = 0 : i64, scratch_operands = 0 : i64, tpu.core_type = #tpu.core_type<tc>, window_params = [{transform_indices = @transform_0, window_bounds = array<i64: 1, 3, 16, 16>}, {transform_indices = @transform_1, window_bounds = array<i64: 1, 16, 16>}, {transform_indices = @transform_2, window_bounds = array<i64: 1, 16, 16>}, {transform_indices = @transform_3, window_bounds = array<i64: 1, 16, 16>}]} {
    %c0 = arith.constant 0 : index
    %c0_0 = arith.constant 0 : index
    %c0_1 = arith.constant 0 : index
    %c0_2 = arith.constant 0 : index
    %0 = vector.load %arg2[%c0, %c0_0, %c0_1, %c0_2] : memref<1x3x16x16xf32, #tpu.memory_space<vmem>>, vector<1x1x16x16xf32>
    %1 = vector.shape_cast %0 : vector<1x1x16x16xf32> to vector<16x16xf32>
    %cst = arith.constant 2.550000e+02 : f32
    %2 = vector.broadcast %cst : f32 to vector<16x16xf32>
    %3 = arith.mulf %1, %2 : vector<16x16xf32>
    %c0_3 = arith.constant 0 : index
    %c1 = arith.constant 1 : index
    %c0_4 = arith.constant 0 : index
    %c0_5 = arith.constant 0 : index
    %4 = vector.load %arg2[%c0_3, %c1, %c0_4, %c0_5] : memref<1x3x16x16xf32, #tpu.memory_space<vmem>>, vector<1x1x16x16xf32>
    %5 = vector.shape_cast %4 : vector<1x1x16x16xf32> to vector<16x16xf32>
    %cst_6 = arith.constant 2.550000e+02 : f32
    %6 = vector.broadcast %cst_6 : f32 to vector<16x16xf32>
    %7 = arith.mulf %5, %6 : vector<16x16xf32>
    %c0_7 = arith.constant 0 : index
    %c2 = arith.constant 2 : index
    %c0_8 = arith.constant 0 : index
    %c0_9 = arith.constant 0 : index
    %8 = vector.load %arg2[%c0_7, %c2, %c0_8, %c0_9] : memref<1x3x16x16xf32, #tpu.memory_space<vmem>>, vector<1x1x16x16xf32>
    %9 = vector.shape_cast %8 : vector<1x1x16x16xf32> to vector<16x16xf32>
    %cst_10 = arith.constant 2.550000e+02 : f32
    %10 = vector.broadcast %cst_10 : f32 to vector<16x16xf32>
    %11 = arith.mulf %9, %10 : vector<16x16xf32>
    %cst_11 = arith.constant 2.990000e-01 : f32
    %12 = vector.broadcast %cst_11 : f32 to vector<16x16xf32>
    %13 = arith.mulf %12, %3 : vector<16x16xf32>
    %cst_12 = arith.constant 5.870000e-01 : f32
    %14 = vector.broadcast %cst_12 : f32 to vector<16x16xf32>
    %15 = arith.mulf %14, %7 : vector<16x16xf32>
    %16 = arith.addf %13, %15 : vector<16x16xf32>
    %cst_13 = arith.constant 1.140000e-01 : f32
    %17 = vector.broadcast %cst_13 : f32 to vector<16x16xf32>
    %18 = arith.mulf %17, %11 : vector<16x16xf32>
    %19 = arith.addf %16, %18 : vector<16x16xf32>
    %c0_14 = arith.constant 0 : index
    %c0_15 = arith.constant 0 : index
    %c0_16 = arith.constant 0 : index
    %20 = vector.load %arg3[%c0_14, %c0_15, %c0_16] : memref<1x16x16xf32, #tpu.memory_space<vmem>>, vector<1x16x16xf32>
    %21 = vector.shape_cast %20 : vector<1x16x16xf32> to vector<16x16xf32>
    %22 = vector.shape_cast %19 : vector<16x16xf32> to vector<1x16x16xf32>
    tpu.vector_store %arg3[%c0_14, %c0_15, %c0_16], %22 {strides = array<i32>} : memref<1x16x16xf32, #tpu.memory_space<vmem>>, vector<1x16x16xf32>,
    %cst_17 = arith.constant -1.687360e-01 : f32
    %23 = vector.broadcast %cst_17 : f32 to vector<16x16xf32>
    %24 = arith.mulf %23, %3 : vector<16x16xf32>
    %cst_18 = arith.constant 3.312640e-01 : f32
    %25 = vector.broadcast %cst_18 : f32 to vector<16x16xf32>
    %26 = arith.mulf %25, %7 : vector<16x16xf32>
    %27 = arith.subf %24, %26 : vector<16x16xf32>
    %cst_19 = arith.constant 5.000000e-01 : f32
    %28 = vector.broadcast %cst_19 : f32 to vector<16x16xf32>
    %29 = arith.mulf %28, %11 : vector<16x16xf32>
    %30 = arith.addf %27, %29 : vector<16x16xf32>
    %cst_20 = arith.constant 1.280000e+02 : f32
    %31 = vector.broadcast %cst_20 : f32 to vector<16x16xf32>
    %32 = arith.addf %30, %31 : vector<16x16xf32>
    %c0_21 = arith.constant 0 : index
    %c0_22 = arith.constant 0 : index
    %c0_23 = arith.constant 0 : index
    %33 = vector.load %arg4[%c0_21, %c0_22, %c0_23] : memref<1x16x16xf32, #tpu.memory_space<vmem>>, vector<1x16x16xf32>
    %34 = vector.shape_cast %33 : vector<1x16x16xf32> to vector<16x16xf32>
    %35 = vector.shape_cast %32 : vector<16x16xf32> to vector<1x16x16xf32>
    tpu.vector_store %arg4[%c0_21, %c0_22, %c0_23], %35 {strides = array<i32>} : memref<1x16x16xf32, #tpu.memory_space<vmem>>, vector<1x16x16xf32>,
    %cst_24 = arith.constant 5.000000e-01 : f32
    %36 = vector.broadcast %cst_24 : f32 to vector<16x16xf32>
    %37 = arith.mulf %36, %3 : vector<16x16xf32>
    %cst_25 = arith.constant 4.186880e-01 : f32
    %38 = vector.broadcast %cst_25 : f32 to vector<16x16xf32>
    %39 = arith.mulf %38, %7 : vector<16x16xf32>
    %40 = arith.subf %37, %39 : vector<16x16xf32>
    %cst_26 = arith.constant 8.131200e-02 : f32
    %41 = vector.broadcast %cst_26 : f32 to vector<16x16xf32>
    %42 = arith.mulf %41, %11 : vector<16x16xf32>
    %43 = arith.subf %40, %42 : vector<16x16xf32>
    %cst_27 = arith.constant 1.280000e+02 : f32
    %44 = vector.broadcast %cst_27 : f32 to vector<16x16xf32>
    %45 = arith.addf %43, %44 : vector<16x16xf32>
    %c0_28 = arith.constant 0 : index
    %c0_29 = arith.constant 0 : index
    %c0_30 = arith.constant 0 : index
    %46 = vector.load %arg5[%c0_28, %c0_29, %c0_30] : memref<1x16x16xf32, #tpu.memory_space<vmem>>, vector<1x16x16xf32>
    %47 = vector.shape_cast %46 : vector<1x16x16xf32> to vector<16x16xf32>
    %48 = vector.shape_cast %45 : vector<16x16xf32> to vector<1x16x16xf32>
    tpu.vector_store %arg5[%c0_28, %c0_29, %c0_30], %48 {strides = array<i32>} : memref<1x16x16xf32, #tpu.memory_space<vmem>>, vector<1x16x16xf32>,
    return
  }
  func.func @transform_0(%arg0: i32, %arg1: i32) -> (i32, i32, i32, i32) {
    %c0_i32 = arith.constant 0 : i32
    %c0_i32_0 = arith.constant 0 : i32
    %c0_i32_1 = arith.constant 0 : i32
    return %arg0, %c0_i32, %arg1, %c0_i32_0 : i32, i32, i32, i32
  }
  func.func @transform_1(%arg0: i32, %arg1: i32) -> (i32, i32, i32) {
    %c0_i32 = arith.constant 0 : i32
    %c0_i32_0 = arith.constant 0 : i32
    return %arg0, %arg1, %c0_i32 : i32, i32, i32
  }
  func.func @transform_2(%arg0: i32, %arg1: i32) -> (i32, i32, i32) {
    %c0_i32 = arith.constant 0 : i32
    %c0_i32_0 = arith.constant 0 : i32
    return %arg0, %arg1, %c0_i32 : i32, i32, i32
  }
  func.func @transform_3(%arg0: i32, %arg1: i32) -> (i32, i32, i32) {
    %c0_i32 = arith.constant 0 : i32
    %c0_i32_0 = arith.constant 0 : i32
    return %arg0, %arg1, %c0_i32 : i32, i32, i32
  }
}

module attributes {stable_mosaic.version = 11 : i64} {
  func.func @_jpeg_block_kernel(%arg0: i32, %arg1: memref<8x128xf32, #tpu.memory_space<vmem>>, %arg2: memref<128x128xf32, #tpu.memory_space<vmem>>, %arg3: memref<128x128xf32, #tpu.memory_space<vmem>>, %arg4: memref<8x128xf32, #tpu.memory_space<vmem>>) attributes {dimension_semantics = [#tpu.dimension_semantics<parallel>], iteration_bounds = array<i64: 1>, scalar_prefetch = 0 : i64, scratch_operands = 0 : i64, tpu.core_type = #tpu.core_type<tc>, window_params = [{transform_indices = @transform_0, window_bounds = array<i64: 8, 128>}, {pipeline_mode = #tpu.pipeline_mode<synchronous>, transform_indices = @transform_1, window_bounds = array<i64: 128, 128>}, {pipeline_mode = #tpu.pipeline_mode<synchronous>, transform_indices = @transform_2, window_bounds = array<i64: 128, 128>}, {transform_indices = @transform_3, window_bounds = array<i64: 8, 128>}]} {
    %c0 = arith.constant 0 : index
    %c0_0 = arith.constant 0 : index
    %0 = vector.load %arg1[%c0, %c0_0] : memref<8x128xf32, #tpu.memory_space<vmem>>, vector<8x128xf32>
    %cst = arith.constant 1.280000e+02 : f32
    %1 = vector.broadcast %cst : f32 to vector<8x128xf32>
    %2 = arith.subf %0, %1 : vector<8x128xf32>
    %c0_1 = arith.constant 0 : index
    %c0_2 = arith.constant 0 : index
    %3 = vector.load %arg2[%c0_1, %c0_2] : memref<128x128xf32, #tpu.memory_space<vmem>>, vector<128x128xf32>
    %cst_3 = arith.constant dense<0.000000e+00> : vector<8x128xf32>
    %4 = tpu.matmul %2, %3, %cst_3 {dimension_numbers = #tpu.dot_dimension_numbers<[1], [0], [0], [1], [0, 0, 1, 1], [], []>} : vector<8x128xf32>, vector<128x128xf32>, vector<8x128xf32> -> vector<8x128xf32>
    %5 = math.roundeven %4 : vector<8x128xf32>
    %6 = arith.subf %4, %5 : vector<8x128xf32>
    %7 = arith.mulf %6, %6 : vector<8x128xf32>
    %8 = arith.mulf %6, %7 : vector<8x128xf32>
    %9 = arith.addf %5, %8 : vector<8x128xf32>
    %c0_4 = arith.constant 0 : index
    %c0_5 = arith.constant 0 : index
    %10 = vector.load %arg3[%c0_4, %c0_5] : memref<128x128xf32, #tpu.memory_space<vmem>>, vector<128x128xf32>
    %cst_6 = arith.constant dense<0.000000e+00> : vector<8x128xf32>
    %11 = tpu.matmul %9, %10, %cst_6 {dimension_numbers = #tpu.dot_dimension_numbers<[1], [0], [0], [1], [0, 0, 1, 1], [], []>} : vector<8x128xf32>, vector<128x128xf32>, vector<8x128xf32> -> vector<8x128xf32>
    %cst_7 = arith.constant 1.280000e+02 : f32
    %12 = vector.broadcast %cst_7 : f32 to vector<8x128xf32>
    %13 = arith.addf %11, %12 : vector<8x128xf32>
    %c0_8 = arith.constant 0 : index
    %c0_9 = arith.constant 0 : index
    %14 = vector.load %arg4[%c0_8, %c0_9] : memref<8x128xf32, #tpu.memory_space<vmem>>, vector<8x128xf32>
    tpu.vector_store %arg4[%c0_8, %c0_9], %13 {strides = array<i32>} : memref<8x128xf32, #tpu.memory_space<vmem>>, vector<8x128xf32>,
    return
  }
  func.func @transform_0(%arg0: i32) -> (i32, i32) {
    %c0_i32 = arith.constant 0 : i32
    %c0_i32_0 = arith.constant 0 : i32
    return %arg0, %c0_i32 : i32, i32
  }
  func.func @transform_1(%arg0: i32) -> (i32, i32) {
    %c0_i32 = arith.constant 0 : i32
    %c0_i32_0 = arith.constant 0 : i32
    %c0_i32_1 = arith.constant 0 : i32
    return %c0_i32, %c0_i32_0 : i32, i32
  }
  func.func @transform_2(%arg0: i32) -> (i32, i32) {
    %c0_i32 = arith.constant 0 : i32
    %c0_i32_0 = arith.constant 0 : i32
    %c0_i32_1 = arith.constant 0 : i32
    return %c0_i32, %c0_i32_0 : i32, i32
  }
  func.func @transform_3(%arg0: i32) -> (i32, i32) {
    %c0_i32 = arith.constant 0 : i32
    %c0_i32_0 = arith.constant 0 : i32
    return %arg0, %c0_i32 : i32, i32
  }
}

module attributes {stable_mosaic.version = 11 : i64} {
  func.func @_ycbcr2rgb_kernel(%arg0: i32, %arg1: i32, %arg2: memref<1x16x16xf32, #tpu.memory_space<vmem>>, %arg3: memref<1x16x16xf32, #tpu.memory_space<vmem>>, %arg4: memref<1x16x16xf32, #tpu.memory_space<vmem>>, %arg5: memref<1x3x16x16xf32, #tpu.memory_space<vmem>>) attributes {dimension_semantics = [#tpu.dimension_semantics<parallel>, #tpu.dimension_semantics<parallel>], iteration_bounds = array<i64: 2, 1>, scalar_prefetch = 0 : i64, scratch_operands = 0 : i64, tpu.core_type = #tpu.core_type<tc>, window_params = [{transform_indices = @transform_0, window_bounds = array<i64: 1, 16, 16>}, {transform_indices = @transform_1, window_bounds = array<i64: 1, 16, 16>}, {transform_indices = @transform_2, window_bounds = array<i64: 1, 16, 16>}, {transform_indices = @transform_3, window_bounds = array<i64: 1, 3, 16, 16>}]} {
    %c0 = arith.constant 0 : index
    %c0_0 = arith.constant 0 : index
    %c0_1 = arith.constant 0 : index
    %0 = vector.load %arg2[%c0, %c0_0, %c0_1] : memref<1x16x16xf32, #tpu.memory_space<vmem>>, vector<1x16x16xf32>
    %1 = vector.shape_cast %0 : vector<1x16x16xf32> to vector<16x16xf32>
    %c0_2 = arith.constant 0 : index
    %c0_3 = arith.constant 0 : index
    %c0_4 = arith.constant 0 : index
    %2 = vector.load %arg3[%c0_2, %c0_3, %c0_4] : memref<1x16x16xf32, #tpu.memory_space<vmem>>, vector<1x16x16xf32>
    %3 = vector.shape_cast %2 : vector<1x16x16xf32> to vector<16x16xf32>
    %cst = arith.constant 1.280000e+02 : f32
    %4 = vector.broadcast %cst : f32 to vector<16x16xf32>
    %5 = arith.subf %3, %4 : vector<16x16xf32>
    %c0_5 = arith.constant 0 : index
    %c0_6 = arith.constant 0 : index
    %c0_7 = arith.constant 0 : index
    %6 = vector.load %arg4[%c0_5, %c0_6, %c0_7] : memref<1x16x16xf32, #tpu.memory_space<vmem>>, vector<1x16x16xf32>
    %7 = vector.shape_cast %6 : vector<1x16x16xf32> to vector<16x16xf32>
    %cst_8 = arith.constant 1.280000e+02 : f32
    %8 = vector.broadcast %cst_8 : f32 to vector<16x16xf32>
    %9 = arith.subf %7, %8 : vector<16x16xf32>
    %cst_9 = arith.constant 1.402000e+00 : f32
    %10 = vector.broadcast %cst_9 : f32 to vector<16x16xf32>
    %11 = arith.mulf %10, %9 : vector<16x16xf32>
    %12 = arith.addf %1, %11 : vector<16x16xf32>
    %cst_10 = arith.constant 3.441360e-01 : f32
    %13 = vector.broadcast %cst_10 : f32 to vector<16x16xf32>
    %14 = arith.mulf %13, %5 : vector<16x16xf32>
    %15 = arith.subf %1, %14 : vector<16x16xf32>
    %cst_11 = arith.constant 7.141360e-01 : f32
    %16 = vector.broadcast %cst_11 : f32 to vector<16x16xf32>
    %17 = arith.mulf %16, %9 : vector<16x16xf32>
    %18 = arith.subf %15, %17 : vector<16x16xf32>
    %cst_12 = arith.constant 1.772000e+00 : f32
    %19 = vector.broadcast %cst_12 : f32 to vector<16x16xf32>
    %20 = arith.mulf %19, %5 : vector<16x16xf32>
    %21 = arith.addf %1, %20 : vector<16x16xf32>
    %cst_13 = arith.constant 0.000000e+00 : f32
    %cst_14 = arith.constant 2.550000e+02 : f32
    %22 = vector.broadcast %cst_13 : f32 to vector<16x16xf32>
    %23 = arith.maximumf %22, %12 : vector<16x16xf32>
    %24 = vector.broadcast %cst_14 : f32 to vector<16x16xf32>
    %25 = arith.minimumf %24, %23 : vector<16x16xf32>
    %cst_15 = arith.constant 0.00392156886 : f32
    %26 = vector.broadcast %cst_15 : f32 to vector<16x16xf32>
    %27 = arith.mulf %25, %26 : vector<16x16xf32>
    %c0_16 = arith.constant 0 : index
    %c0_17 = arith.constant 0 : index
    %c0_18 = arith.constant 0 : index
    %c0_19 = arith.constant 0 : index
    %28 = vector.load %arg5[%c0_16, %c0_17, %c0_18, %c0_19] : memref<1x3x16x16xf32, #tpu.memory_space<vmem>>, vector<1x1x16x16xf32>
    %29 = vector.shape_cast %28 : vector<1x1x16x16xf32> to vector<16x16xf32>
    %30 = vector.shape_cast %27 : vector<16x16xf32> to vector<1x1x16x16xf32>
    tpu.vector_store %arg5[%c0_16, %c0_17, %c0_18, %c0_19], %30 {strides = array<i32>} : memref<1x3x16x16xf32, #tpu.memory_space<vmem>>, vector<1x1x16x16xf32>,
    %cst_20 = arith.constant 0.000000e+00 : f32
    %cst_21 = arith.constant 2.550000e+02 : f32
    %31 = vector.broadcast %cst_20 : f32 to vector<16x16xf32>
    %32 = arith.maximumf %31, %18 : vector<16x16xf32>
    %33 = vector.broadcast %cst_21 : f32 to vector<16x16xf32>
    %34 = arith.minimumf %33, %32 : vector<16x16xf32>
    %cst_22 = arith.constant 0.00392156886 : f32
    %35 = vector.broadcast %cst_22 : f32 to vector<16x16xf32>
    %36 = arith.mulf %34, %35 : vector<16x16xf32>
    %c0_23 = arith.constant 0 : index
    %c1 = arith.constant 1 : index
    %c0_24 = arith.constant 0 : index
    %c0_25 = arith.constant 0 : index
    %37 = vector.load %arg5[%c0_23, %c1, %c0_24, %c0_25] : memref<1x3x16x16xf32, #tpu.memory_space<vmem>>, vector<1x1x16x16xf32>
    %38 = vector.shape_cast %37 : vector<1x1x16x16xf32> to vector<16x16xf32>
    %39 = vector.shape_cast %36 : vector<16x16xf32> to vector<1x1x16x16xf32>
    tpu.vector_store %arg5[%c0_23, %c1, %c0_24, %c0_25], %39 {strides = array<i32>} : memref<1x3x16x16xf32, #tpu.memory_space<vmem>>, vector<1x1x16x16xf32>,
    %cst_26 = arith.constant 0.000000e+00 : f32
    %cst_27 = arith.constant 2.550000e+02 : f32
    %40 = vector.broadcast %cst_26 : f32 to vector<16x16xf32>
    %41 = arith.maximumf %40, %21 : vector<16x16xf32>
    %42 = vector.broadcast %cst_27 : f32 to vector<16x16xf32>
    %43 = arith.minimumf %42, %41 : vector<16x16xf32>
    %cst_28 = arith.constant 0.00392156886 : f32
    %44 = vector.broadcast %cst_28 : f32 to vector<16x16xf32>
    %45 = arith.mulf %43, %44 : vector<16x16xf32>
    %c0_29 = arith.constant 0 : index
    %c2 = arith.constant 2 : index
    %c0_30 = arith.constant 0 : index
    %c0_31 = arith.constant 0 : index
    %46 = vector.load %arg5[%c0_29, %c2, %c0_30, %c0_31] : memref<1x3x16x16xf32, #tpu.memory_space<vmem>>, vector<1x1x16x16xf32>
    %47 = vector.shape_cast %46 : vector<1x1x16x16xf32> to vector<16x16xf32>
    %48 = vector.shape_cast %45 : vector<16x16xf32> to vector<1x1x16x16xf32>
    tpu.vector_store %arg5[%c0_29, %c2, %c0_30, %c0_31], %48 {strides = array<i32>} : memref<1x3x16x16xf32, #tpu.memory_space<vmem>>, vector<1x1x16x16xf32>,
    return
  }
  func.func @transform_0(%arg0: i32, %arg1: i32) -> (i32, i32, i32) {
    %c0_i32 = arith.constant 0 : i32
    %c0_i32_0 = arith.constant 0 : i32
    return %arg0, %arg1, %c0_i32 : i32, i32, i32
  }
  func.func @transform_1(%arg0: i32, %arg1: i32) -> (i32, i32, i32) {
    %c0_i32 = arith.constant 0 : i32
    %c0_i32_0 = arith.constant 0 : i32
    return %arg0, %arg1, %c0_i32 : i32, i32, i32
  }
  func.func @transform_2(%arg0: i32, %arg1: i32) -> (i32, i32, i32) {
    %c0_i32 = arith.constant 0 : i32
    %c0_i32_0 = arith.constant 0 : i32
    return %arg0, %arg1, %c0_i32 : i32, i32, i32
  }
  func.func @transform_3(%arg0: i32, %arg1: i32) -> (i32, i32, i32, i32) {
    %c0_i32 = arith.constant 0 : i32
    %c0_i32_0 = arith.constant 0 : i32
    %c0_i32_1 = arith.constant 0 : i32
    return %arg0, %c0_i32, %arg1, %c0_i32_0 : i32, i32, i32, i32
  }
}

</mosaic_0001>

<bundles_post_ra>
// kernel: diff_jpeg.5
= control target key start
LH: loop header
LB: loop body
LE: loop exit
PB: predicated region body
PF: predicated region fallthrough
CT: control target
= control target key end

     0   :  { %v313_v0 = vmov 0.0   ;;  %vm314_vm0 = vmmov 0   ;;  %s471_s1 = inlined_call_operand.vmem [shape: f32[128,128], index: 1, kind: input, shape index: {}]   ;;  %s472_s2 = inlined_call_operand.vmem [shape: f32[128,128], index: 2, kind: input, shape index: {}]   ;;  %s473_s0 = inlined_call_operand.vmem [shape: f32[8,128], index: 0, kind: input, shape index: {}]   ;;  %s474_s3 = inlined_call_operand.vmem [shape: f32[8,128], index: 3, kind: output, shape index: {}]  }
   0x1   :  { %233 = vmatprep.subr.mxu0 %v313_v0  ;;  %v31_v1 = vld [vmem:[%s471_s1 + $0x78] sm:$0xff]  ;;  %v30_v2 = vld [vmem:[%s471_s1 + $0x70] sm:$0xff]  ;;  %265 = vmatprep.mubr.msk.f32.mxu0 %vm314_vm0, %v313_v0  ;;  %v29_v3 = vld [vmem:[%s471_s1 + $0x68] sm:$0xff] }
   0x2   :  { %234 = vmatpush3.msra.mxu0 %v31_v1  ;;  %268 = vmatprep.subr.mxu1 %v313_v0  ;;  %v28_v4 = vld [vmem:[%s471_s1 + $0x60] sm:$0xff]  ;;  %v122_v5 = vld [vmem:[%s472_s2 + $0x78] sm:$0xff]  ;;  %v121_v7 = vld [vmem:[%s472_s2 + $0x70] sm:$0xff] }
   0x3   :  { %235 = vmatprep.subr.mxu0 %v313_v0  ;;  %300 = vmatprep.mubr.msk.f32.mxu1 %vm314_vm0, %v313_v0  ;;  %v27_v6 = vld [vmem:[%s471_s1 + $0x58] sm:$0xff]  ;;  %v120_v8 = vld [vmem:[%s472_s2 + $0x68] sm:$0xff]  ;;  %v26_v9 = vld [vmem:[%s471_s1 + $0x50] sm:$0xff] }
   0x4   :  { %236 = vmatpush3.msra.mxu0 %v30_v2  ;;  %269 = vmatpush3.msra.mxu1 %v122_v5  ;;  %v119_v10 = vld [vmem:[%s472_s2 + $0x60] sm:$0xff]  ;;  %v25_v11 = vld [vmem:[%s471_s1 + $0x48] sm:$0xff]  ;;  %v118_v12 = vld [vmem:[%s472_s2 + $0x58] sm:$0xff] }
   0x5   :  { %237 = vmatprep.subr.mxu0 %v313_v0  ;;  %270 = vmatprep.subr.mxu1 %v313_v0  ;;  %v24_v13 = vld [vmem:[%s471_s1 + $0x40] sm:$0xff]  ;;  %v117_v14 = vld [vmem:[%s472_s2 + $0x50] sm:$0xff]  ;;  %v23_v15 = vld [vmem:[%s471_s1 + $0x38] sm:$0xff] }
   0x6   :  { %238 = vmatpush3.msra.mxu0 %v29_v3  ;;  %271 = vmatpush3.msra.mxu1 %v121_v7  ;;  %v116_v16 = vld [vmem:[%s472_s2 + $0x48] sm:$0xff]  ;;  %v22_v17 = vld [vmem:[%s471_s1 + $0x30] sm:$0xff]  ;;  %v20_v19 = vld [vmem:[%s471_s1 + $0x20] sm:$0xff] }
   0x7   :  { %239 = vmatprep.subr.mxu0 %v313_v0  ;;  %272 = vmatprep.subr.mxu1 %v313_v0  ;;  %v21_v18 = vld [vmem:[%s471_s1 + $0x28] sm:$0xff]  ;;  %v19_v20 = vld [vmem:[%s471_s1 + $0x18] sm:$0xff]  ;;  %v18_v21 = vld [vmem:[%s471_s1 + $0x10] sm:$0xff] }
   0x8   :  { %240 = vmatpush3.msra.mxu0 %v28_v4  ;;  %273 = vmatpush3.msra.mxu1 %v120_v8  ;;  %v14_v22 = vld [vmem:[%s473_s0] sm:$0xff]  ;;  %v17_v23 = vld [vmem:[%s471_s1 + $0x8] sm:$0xff]  ;;  %v114_v27 = vld [vmem:[%s472_s2 + $0x38] sm:$0xff] }
   0x9   :  { %241 = vmatprep.subr.mxu0 %v313_v0  ;;  %274 = vmatprep.subr.mxu1 %v313_v0  ;;  %v16_v24 = vld [vmem:[%s471_s1] sm:$0xff]  ;;  %v198_v25 = vadd.f32 -128.0, %v14_v22  ;;  %v113_v28 = vld [vmem:[%s472_s2 + $0x30] sm:$0xff]  ;;  %v112_v29 = vld [vmem:[%s472_s2 + $0x28] sm:$0xff] }
   0xa   :  { %242 = vmatpush3.msra.mxu0 %v27_v6  ;;  %275 = vmatpush3.msra.mxu1 %v119_v10  ;;  %v115_v26 = vld [vmem:[%s472_s2 + $0x40] sm:$0xff]  ;;  %v110_v31 = vld [vmem:[%s472_s2 + $0x18] sm:$0xff]  ;;  %v109_v32 = vld [vmem:[%s472_s2 + $0x10] sm:$0xff] }
   0xb   :  { %243 = vmatprep.subr.mxu0 %v313_v0  ;;  %276 = vmatprep.subr.mxu1 %v313_v0  ;;  %v111_v30 = vld [vmem:[%s472_s2 + $0x20] sm:$0xff]  ;;  %v108_v33 = vld [vmem:[%s472_s2 + $0x8] sm:$0xff] }
   0xc   :  { %244 = vmatpush3.msra.mxu0 %v26_v9  ;;  %277 = vmatpush3.msra.mxu1 %v118_v12  ;;  %v107_v34 = vld [vmem:[%s472_s2] sm:$0xff] }
   0xd   :  { %245 = vmatprep.subr.mxu0 %v313_v0  ;;  %278 = vmatprep.subr.mxu1 %v313_v0 }
   0xe   :  { %246 = vmatpush3.msra.mxu0 %v25_v11  ;;  %279 = vmatpush3.msra.mxu1 %v117_v14 }
   0xf   :  { %247 = vmatprep.subr.mxu0 %v313_v0  ;;  %280 = vmatprep.subr.mxu1 %v313_v0 }
  0x10   :  { %248 = vmatpush3.msra.mxu0 %v24_v13  ;;  %281 = vmatpush3.msra.mxu1 %v116_v16 }
  0x11   :  { %249 = vmatprep.subr.mxu0 %v313_v0  ;;  %282 = vmatprep.subr.mxu1 %v313_v0 }
  0x12   :  { %250 = vmatpush3.msra.mxu0 %v23_v15  ;;  %283 = vmatpush3.msra.mxu1 %v115_v26 }
  0x13   :  { %251 = vmatprep.subr.mxu0 %v313_v0  ;;  %284 = vmatprep.subr.mxu1 %v313_v0 }
  0x14   :  { %252 = vmatpush3.msra.mxu0 %v22_v17  ;;  %285 = vmatpush3.msra.mxu1 %v114_v27 }
  0x15   :  { %253 = vmatprep.subr.mxu0 %v313_v0  ;;  %286 = vmatprep.subr.mxu1 %v313_v0 }
  0x16   :  { %254 = vmatpush3.msra.mxu0 %v21_v18  ;;  %287 = vmatpush3.msra.mxu1 %v113_v28 }
  0x17   :  { %255 = vmatprep.subr.mxu0 %v313_v0  ;;  %288 = vmatprep.subr.mxu1 %v313_v0 }
  0x18   :  { %256 = vmatpush3.msra.mxu0 %v20_v19  ;;  %289 = vmatpush3.msra.mxu1 %v112_v29 }
  0x19   :  { %257 = vmatprep.subr.mxu0 %v313_v0  ;;  %290 = vmatprep.subr.mxu1 %v313_v0 }
  0x1a   :  { %258 = vmatpush3.msra.mxu0 %v19_v20  ;;  %291 = vmatpush3.msra.mxu1 %v111_v30 }
  0x1b   :  { %259 = vmatprep.subr.mxu0 %v313_v0  ;;  %292 = vmatprep.subr.mxu1 %v313_v0 }
  0x1c   :  { %260 = vmatpush3.msra.mxu0 %v18_v21  ;;  %293 = vmatpush3.msra.mxu1 %v110_v31 }
  0x1d   :  { %261 = vmatprep.subr.mxu0 %v313_v0  ;;  %294 = vmatprep.subr.mxu1 %v313_v0 }
  0x1e   :  { %262 = vmatpush3.msra.mxu0 %v17_v23  ;;  %295 = vmatpush3.msra.mxu1 %v109_v32 }
  0x1f   :  { %263 = vmatprep.subr.mxu0 %v313_v0  ;;  %296 = vmatprep.subr.mxu1 %v313_v0 }
  0x20   :  { %264 = vmatpush3.msra.mxu0 %v16_v24  ;;  %297 = vmatpush3.msra.mxu1 %v108_v33 }
  0x21   :  { %266 = vmatmul.mubr.f32.vlgmr.msra.gmra.mxu0 %v198_v25  ;;  %298 = vmatprep.subr.mxu1 %v313_v0 }
  0x22   :  { %299 = vmatpush3.msra.mxu1 %v107_v34 }
  0xe1   :  { %v98_v35 = vpop.f32.mrf.mxu0 }
  0xe2   :  { %v305_v36 = vcvt.f32.s32 %v98_v35  ;;  %v303_v39 = vand.u32 2147483647, %v98_v35  ;;  %v308_v41 = vand.u32 2147483648, %v98_v35 }
  0xe3   :  { %v267_v37 = vpop.f32.mrf.mxu0 }
  0xe4   :  { %v306_v38 = vcvt.s32.f32 %v305_v36  ;;  %vm304_vm1 = vcmp.lt.f32.partialorder %v303_v39, 8388608.0 }
  0xe6   :  { %v307_v40 = vand.u32 2147483647, %v306_v38 }
  0xe8   :  { %v309_v42 = vor.u32 %v308_v41, %v307_v40 }
  0xea   :  { %v310_v43 = vsel %vm304_vm1, %v309_v42, %v98_v35 }
  0xeb   :  { %v103_v44 = vsub.f32 %v98_v35, %v310_v43 }
  0xed   :  { %v104_v45 = vmul.f32 %v103_v44, %v103_v44 }
  0xef   :  { %v105_v46 = vmul.f32 %v104_v45, %v103_v44 }
  0xf1   :  { %v106_v47 = vadd.f32 %v310_v43, %v105_v46 }
  0xf3   :  { %301 = vmatmul.mubr.f32.vlgmr.msra.gmra.mxu1 %v106_v47 }
 0x1b3   :  { %v189_v48 = vpop.f32.mrf.mxu1 }
 0x1b4   :  { %v190_v49 = vadd.f32 128.0, %v189_v48 }
 0x1b5   :  { %v302_v50 = vpop.f32.mrf.mxu1 }
 0x1b6   :  { %193 = vst [vmem:[%s474_s3] sm:$0xff] %v190_v49 }

// kernel: diff_jpeg.4
= control target key start
LH: loop header
LB: loop body
LE: loop exit
PB: predicated region body
PF: predicated region fallthrough
CT: control target
= control target key end

     0   :  { %9 = vsyncpa [#allocation3], 0  ;;  %s807_s0 = inlined_call_operand.hbm [shape: f32[2,3,16,16], index: 0, kind: input, shape index: {}]   ;;  %s808_s1 = inlined_call_operand.vmem [shape: f32[2,16,16], index: 1, kind: output, shape index: {0}]   ;;  %s809_s2 = inlined_call_operand.vmem [shape: f32[2,16,16], index: 2, kind: output, shape index: {1}]   ;;  %s810_s3 = inlined_call_operand.vmem [shape: f32[2,16,16], index: 3, kind: output, shape index: {2}]  }
   0x1   :  { %11 = vsyncpa [#allocation3 + $0x1], 0  ;;  %s700_s12 = smov 0   ;;  %s702_s13 = smov 0  }
   0x2   :  { %s704_s14 = smov 0   ;;  %s706_s15 = smov 0  }
   0x3   :  { %s708_s16 = smov 0   ;;  %s710_s17 = smov 0  }
   0x4 LB: > { %s516_s18 = sadd.s32 4294967295, %s675_s17   ;;  %s29_s19 = sadd.s32 1, %s671_s16  ;;  %s675_s17 = sphi %s710_s17, %s17_s17   ;;  %s671_s16 = sphi %s708_s16, %s817_s16   ;;  %s667_s15 = sphi %s706_s15, %s816_s15   ;;  %s663_s14 = sphi %s704_s14, %s815_s14   ;;  %s659_s13 = sphi %s702_s13, %s814_s13   ;;  %s655_s12 = sphi %s700_s12, %s813_s12  }
   0x5   : > { %p31_p0 = scmp.ge.s32.totalorder %s29_s19, 2  ;;  %s38_s20 = sadd.s32 1, %s663_s14 }
   0x6   : > { %p45_p1 = scmp.ne.s32.totalorder %s663_s14, %s659_s13  ;;  %p46_p2 = scmp.eq.s32.totalorder %s675_s17, 0 }
   0x7   : > { %s819_s19 = smov (%p31_p0, %s29_s19), 0  ;;  %p51_p4 = scmp.ne.s32.totalorder %s659_s13, %s655_s12 }
   0x8   : > { %p47_p3 = por %p46_p2, %p45_p1  ;;  %s33_s21 = ssub.s32 %s671_s16, %s819_s19 }
   0x9   : > { %p52_p5 = scmp.eq.s32.totalorder %s516_s18, 0  ;;  %p36_p6 = scmp.eq.s32.totalorder %s33_s21, 0 }
   0xa   : > { %p546_p8 = scmp.lt.s32.totalorder %s675_s17, 2  ;;  %s159_s24 = sand.u32 1, %s663_s14  }
   0xb   : > { %p739_p7 = por %p52_p5, %p51_p4  ;;  %s538_s25 = smul.u32 768, %s671_s16 }
   0xc   : > { %s745_s23 = scalar_select %p36_p6, %s663_s14, %s38_s20  }
   0xd   : > { %s537_s26 = smul.u32 48, %s159_s24  ;;  %s171_s29 = scalar_lea.hbm %s807_s0, %s538_s25 }
   0xe   : > { %p752_p9 = pnand %p546_p8, %p47_p3  ;;  %s160_s6 = scalar_lea.sflag [#allocation3], %s159_s24 }
   0xf   : > { %s163_s4 = scalar_lea.vmem [#allocation2], %s537_s26  ;;  %s677_s8 = smov [#allocation2]  }
  0x10   : > { %s172_s5 = sshll.u32 %s163_s4, 4  ;;  %p599_p10 = pneg %p752_p9  ;;  %s173_s5 = int_to_ptr.vmem [resolvable:$true] %s172_s5 }
  0x11   : > { %s610_s7 = scalar_lea.vmem %s173_s5, 768  ;;  %s615_s9 = sshll.u32 %s677_s8, 4  ;;  %s616_s9 = int_to_ptr.vmem [resolvable:$false] %s615_s9 }
  0x12   : > { %p611_p11 = scmp.ne.s32.totalorder %s173_s5, %s610_s7  ;;  %s617_s10 = scalar_lea.vmem %s616_s9, 1536 }
  0x13   : > { %p618_p0 = scmp.lt.s32.totalorder %s173_s5, %s616_s9  ;;  %p619_p1 = scmp.lt.s32.totalorder %s617_s10, %s610_s7 }
  0x14   : > { %p613_p12 = pnand %p611_p11, %p599_p10 }
  0x15   : > { %p620_p2 = por %p619_p1, %p618_p0 }
  0x16   : > { %p614_p13 = pneg %p613_p12 }
  0x18   : > { %p621_p3 = pnand %p620_p2, %p614_p13 }
  0x1a   : > { %624 = shalt.err (!%p621_p3)
}
  0x1b   : > { %s678_s11 = smov 128   ;;  %s679_s12 = smov 8  }
  0x1c   : > { %545 = dma.hbm_to_vmem [thread:$0]  (!%p752_p9), %s171_s29, 768, %s173_s5, %s160_s6, %s678_s11, %s678_s11, %s679_s12  }
  0x1d   : > { %p521_p4 = scmp.ge.s32.totalorder %s675_s17, 1  ;;  %p180_p5 = scmp.lt.s32.totalorder %s675_s17, 3 }
  0x1f   : > { %p181_p6 = pnand %p521_p4, %p180_p5 }
  0x20   : > { %s186_s18 = sand.u32 (!%p181_p6), 1, %s659_s13  }
  0x21   : > { %184 = sbr.rel (%p181_p6) target bundleno = 57 (0x39), region = 24  ;;  %s187_s21 = scalar_lea.sflag (!%p181_p6), [#allocation3], %s186_s18 }
  0x22   : > { %s539_s20 = smul.u32 (!%p181_p6), 48, %s186_s18 }
  0x24   : > { %s190_s24 = scalar_lea.vmem (!%p181_p6), [#allocation2], %s539_s20 }
  0x26   : > { %650 = dma.done.wait (%p739_p7), %s187_s21, 768  }
  0x27   : > { %652 = vsyncadd (%p739_p7), %s187_s21, 4294966528  ;;  %p237_p8 = scmp.lt.s32.totalorder %s667_s15, 1  ;;  %v266_v0 = vld [vmem:[%s190_s24] sm:$0xff]  ;;  %v528_v1 = vld [vmem:[%s190_s24 + $0x10] sm:$0xff]  ;;  %vm290_vm0 = vcmask 130048  }
  0x28   : > { %v530_v2 = vld [vmem:[%s190_s24 + $0x20] sm:$0xff]  ;;  %v268_v3 = vmul.f32 255.0, %v266_v0  ;;  %v273_v4 = vmul.f32 255.0, %v528_v1  ;;  %v267_v6 = vld [vmem:[%s190_s24 + $0x8] sm:$0xff]  ;;  %v529_v7 = vld [vmem:[%s190_s24 + $0x18] sm:$0xff] }
  0x29   : > { %s821_s15 = smov (!%p237_p8, %s667_s15), 1  ;;  %v278_v5 = vmul.f32 255.0, %v530_v2  ;;  %v531_v8 = vld [vmem:[%s190_s24 + $0x28] sm:$0xff]  ;;  %v269_v9 = vmul.f32 255.0, %v267_v6  ;;  %v274_v10 = vmul.f32 255.0, %v529_v7 }
  0x2a   : > { %s769_s25 = sshll.u32 %s821_s15, 4  ;;  %v279_v11 = vmul.f32 255.0, %v531_v8  ;;  %v280_v12 = vmul.f32 0.299, %v268_v3  ;;  %v282_v13 = vmul.f32 0.587, %v273_v4 }
  0x2b   : > { %v286_v14 = vmul.f32 0.114, %v278_v5  ;;  %v281_v15 = vmul.f32 0.299, %v269_v9  ;;  %v283_v16 = vmul.f32 0.587, %v274_v10  ;;  %s244_s15 = scalar_lea.vmem %s808_s1, %s769_s25  ;;  %s254_s29 = scalar_lea.vmem %s809_s2, %s769_s25 }
  0x2c   : > { %v287_v17 = vmul.f32 0.114, %v279_v11  ;;  %v284_v18 = vadd.f32 %v282_v13, %v280_v12  ;;  %v293_v19 = vmul.f32 -0.168736, %v268_v3  ;;  %v295_v20 = vmul.f32 0.331264, %v273_v4  ;;  %s264_s5 = scalar_lea.vmem %s810_s3, %s769_s25 }
  0x2d   : > { %v299_v21 = vmul.f32 0.5, %v278_v5  ;;  %v285_v22 = vadd.f32 %v283_v16, %v281_v15  ;;  %v294_v23 = vmul.f32 -0.168736, %v269_v9  ;;  %v296_v24 = vmul.f32 0.331264, %v274_v10 }
  0x2e   : > { %v300_v25 = vmul.f32 0.5, %v279_v11  ;;  %v288_v26 = vadd.f32 %v286_v14, %v284_v18  ;;  %v297_v27 = vsub.f32 %v293_v19, %v295_v20  ;;  %v307_v28 = vmul.f32 0.5, %v268_v3 }
  0x2f   : > { %v309_v29 = vmul.f32 0.418688, %v273_v4  ;;  %v289_v30 = vadd.f32 %v287_v17, %v285_v22  ;;  %v298_v31 = vsub.f32 %v294_v23, %v296_v24  ;;  %v313_v32 = vmul.f32 0.081312, %v278_v5 }
  0x30   : > { %v308_v33 = vmul.f32 0.5, %v269_v9  ;;  %291 = vst.msk [vmem:[%s244_s15] sm:$0xff] %vm290_vm0, %v288_v26  ;;  %v301_v34 = vadd.f32 %v299_v21, %v297_v27  ;;  %v310_v36 = vmul.f32 0.418688, %v274_v10  ;;  %v314_v37 = vmul.f32 0.081312, %v279_v11 }
  0x31   : > { %v311_v35 = vsub.f32 %v307_v28, %v309_v29  ;;  %292 = vst.msk [vmem:[%s244_s15 + $0x8] sm:$0xff] %vm290_vm0, %v289_v30  ;;  %v302_v38 = vadd.f32 %v300_v25, %v298_v31 }
  0x32   : > { %v303_v39 = vadd.f32 128.0, %v301_v34  ;;  %v312_v41 = vsub.f32 %v308_v33, %v310_v36 }
  0x33   : > { %v315_v40 = vsub.f32 %v311_v35, %v313_v32  ;;  %v304_v42 = vadd.f32 128.0, %v302_v38 }
  0x34   : > { %305 = vst.msk [vmem:[%s254_s29] sm:$0xff] %vm290_vm0, %v303_v39  ;;  %v316_v44 = vsub.f32 %v312_v41, %v314_v37 }
  0x35   : > { %v317_v43 = vadd.f32 128.0, %v315_v40  ;;  %306 = vst.msk [vmem:[%s254_s29 + $0x8] sm:$0xff] %vm290_vm0, %v304_v42 }
  0x36   : > { %v318_v45 = vadd.f32 128.0, %v316_v44 }
  0x37   : > { %319 = vst.msk [vmem:[%s264_s5] sm:$0xff] %vm290_vm0, %v317_v43 }
  0x38   : > { %320 = vst.msk [vmem:[%s264_s5 + $0x8] sm:$0xff] %vm290_vm0, %v318_v45 }
  0x39 PF: > { %s17_s17 = sadd.s32 1, %s675_s17   ;;  %s813_s12 = smov %s659_s13 }
  0x3a   : > { %p14_p7 = scmp.ge.s32.totalorder %s17_s17, 4   ;;  %s814_s13 = smov %s663_s14 }
  0x3b   : > { %s815_s14 = smov %s745_s23  ;;  %s816_s15 = smov %s671_s16 }
  0x3c   : > { %s817_s16 = smov %s819_s19  ;;  %16 = sbr.rel (!%p14_p7) target bundleno = 4 (0x4), region = 90 }
  0x41   :  { %401 = vsyncpa [#allocation3], 1 }
  0x42   :  { %403 = vsyncpa [#allocation3 + $0x1], 1 }

// kernel: diff_jpeg.7
= control target key start
LH: loop header
LB: loop body
LE: loop exit
PB: predicated region body
PF: predicated region fallthrough
CT: control target
= control target key end

     0   :  { %8 = vsyncpa [#allocation3], 0  ;;  %s771_s0 = inlined_call_operand.vmem [shape: f32[2,16,16], index: 0, kind: input, shape index: {}]   ;;  %s772_s1 = inlined_call_operand.vmem [shape: f32[2,16,16], index: 1, kind: input, shape index: {}]   ;;  %s773_s2 = inlined_call_operand.vmem [shape: f32[2,16,16], index: 2, kind: input, shape index: {}]   ;;  %s774_s3 = inlined_call_operand.hbm [shape: f32[2,3,16,16], index: 3, kind: output, shape index: {}]  }
   0x1   :  { %10 = vsyncpa [#allocation3 + $0x1], 0  ;;  %s641_s12 = smov 0   ;;  %s643_s13 = smov 0  }
   0x2   :  { %s645_s14 = smov 0   ;;  %s647_s15 = smov 0  }
   0x3   :  { %s649_s16 = smov 0   ;;  %s651_s17 = smov 0  }
   0x4 LB: > { %s456_s18 = sadd.s32 4294967295, %s616_s17   ;;  %s457_s19 = sadd.s32 4294967294, %s616_s17   ;;  %s616_s17 = sphi %s651_s17, %s16_s17   ;;  %s612_s16 = sphi %s649_s16, %s781_s16   ;;  %s608_s15 = sphi %s647_s15, %s780_s15   ;;  %s604_s14 = sphi %s645_s14, %s779_s14   ;;  %s600_s13 = sphi %s643_s13, %s778_s13   ;;  %s596_s12 = sphi %s641_s12, %s777_s12  }
   0x5   : > { %s28_s20 = sadd.s32 1, %s612_s16  ;;  %s121_s21 = sadd.s32 1, %s604_s14 }
   0x6   : > { %p30_p0 = scmp.ge.s32.totalorder %s28_s20, 2  ;;  %p131_p1 = scmp.ne.s32.totalorder %s604_s14, %s600_s13 }
   0x7   : > { %p132_p2 = scmp.eq.s32.totalorder %s456_s18, 1  ;;  %p137_p3 = scmp.ne.s32.totalorder %s600_s13, %s596_s12 }
   0x8   : > { %s783_s20 = smov (%p30_p0, %s28_s20), 0  ;;  %p138_p5 = scmp.eq.s32.totalorder %s457_s19, 1 }
   0x9   : > { %p681_p4 = por %p132_p2, %p131_p1  ;;  %s116_s23 = ssub.s32 %s612_s16, %s783_s20 }
   0xa   : > { %p460_p6 = scmp.ge.s32.totalorder %s616_s17, 1  ;;  %p119_p7 = scmp.eq.s32.totalorder %s116_s23, 0 }
   0xb   : > { %p688_p8 = por %p138_p5, %p137_p3  ;;  %p195_p9 = scmp.lt.s32.totalorder %s616_s17, 3 }
   0xc   : > { %s694_s25 = scalar_select %p119_p7, %s604_s14, %s121_s21  }
   0xd   : > { %p196_p10 = pnand %p460_p6, %p195_p9 }
   0xe   : > { %p242_p11 = scmp.lt.s32.totalorder (!%p196_p10), %s608_s15, 1  ;;  %s238_s28 = sand.u32 (!%p196_p10), 1, %s600_s13  }
   0xf   : > { %199 = sbr.rel (%p196_p10) target bundleno = 54 (0x36), region = 32  ;;  %s618_s30 = smov (!%p196_p10), [#allocation2]  }
  0x10   : > { %s481_s11 = smul.u32 (!%p196_p10), 48, %s238_s28 }
  0x11   : > { %s482_s18 = smul.u32 (!%p196_p10), 768, %s608_s15 }
  0x12   : > { %s240_s19 = scalar_lea.vmem (!%p196_p10), [#allocation2], %s481_s11 }
  0x13   : > { %s341_s21 = sshll.u32 (!%p196_p10), %s240_s19, 4  ;;  %s712_s21 = int_to_ptr.vmem [resolvable:$true] %s341_s21 }
  0x14   : > { %s243_s26 = scalar_select %p242_p11, %s608_s15, 1  ;;  %vm304_vm0 = vcmask 130048  }
  0x15   : > { %s540_s29 = scalar_lea.vmem %s712_s21, 768 }
  0x16   : > { %s478_s27 = sshll.u32 %s243_s26, 4  ;;  %s717_s26 = scalar_lea.hbm %s774_s3, %s482_s18 }
  0x17   : > { %s269_s4 = scalar_lea.vmem %s773_s2, %s478_s27  ;;  %s249_s7 = scalar_lea.vmem %s771_s0, %s478_s27 }
  0x18   : > { %v278_v0 = vld [vmem:[%s269_s4] sm:$0xff]  ;;  %s259_s10 = scalar_lea.vmem %s772_s1, %s478_s27  ;;  %v279_v2 = vld [vmem:[%s269_s4 + $0x8] sm:$0xff]  ;;  %s726_s27 = scalar_lea.sflag [#allocation3], %s238_s28 }
  0x19   : > { %v469_v1 = vadd.f32 -128.0, %v278_v0  ;;  %v274_v3 = vld [vmem:[%s259_s10] sm:$0xff]  ;;  %v275_v4 = vld [vmem:[%s259_s10 + $0x8] sm:$0xff]  ;;  %v470_v5 = vadd.f32 -128.0, %v279_v2  ;;  %p541_p12 = scmp.ne.s32.totalorder %s712_s21, %s540_s29  ;;  %s544_s4 = sshll.u32 %s618_s30, 4  ;;  %s545_s4 = int_to_ptr.vmem [resolvable:$false] %s544_s4 }
  0x1a   : > { %v467_v6 = vadd.f32 -128.0, %v274_v3  ;;  %v468_v7 = vadd.f32 -128.0, %v275_v4  ;;  %v272_v8 = vld [vmem:[%s249_s7] sm:$0xff]  ;;  %v273_v10 = vld [vmem:[%s249_s7 + $0x8] sm:$0xff]  ;;  %s546_s5 = scalar_lea.vmem %s545_s4, 1536  ;;  %p547_p1 = scmp.lt.s32.totalorder %s712_s21, %s545_s4 }
  0x1b   : > { %v282_v9 = vmul.f32 1.402, %v469_v1  ;;  %v290_v11 = vmul.f32 0.714136, %v469_v1  ;;  %v283_v12 = vmul.f32 1.402, %v470_v5  ;;  %p542_p13 = pnand %p541_p12, %p681_p4  ;;  %p548_p2 = scmp.lt.s32.totalorder %s546_s5, %s540_s29 }
  0x1c   : > { %v286_v13 = vmul.f32 0.344136, %v467_v6  ;;  %v287_v14 = vmul.f32 0.344136, %v468_v7  ;;  %v291_v16 = vmul.f32 0.714136, %v470_v5 }
  0x1d   : > { %v284_v15 = vadd.f32 %v282_v9, %v272_v8  ;;  %v294_v17 = vmul.f32 1.772, %v467_v6  ;;  %v295_v18 = vmul.f32 1.772, %v468_v7  ;;  %v285_v19 = vadd.f32 %v283_v12, %v273_v10  ;;  %p543_p0 = pneg %p542_p13  ;;  %p549_p3 = por %p548_p2, %p547_p1 }
  0x1e   : > { %v288_v20 = vsub.f32 %v272_v8, %v286_v13  ;;  %v289_v21 = vsub.f32 %v273_v10, %v287_v14 }
  0x1f   : > { %v298_v22 = vmax.f32 %v284_v15, 0.0  ;;  %v296_v23 = vadd.f32 %v294_v17, %v272_v8  ;;  %v297_v24 = vadd.f32 %v295_v18, %v273_v10  ;;  %v299_v25 = vmax.f32 %v285_v19, 0.0  ;;  %p550_p5 = pnand %p549_p3, %p543_p0 }
  0x20   : > { %v292_v26 = vsub.f32 %v288_v20, %v290_v11  ;;  %v293_v27 = vsub.f32 %v289_v21, %v291_v16 }
  0x21   : > { %v300_v28 = vmin.f32 %v298_v22, 255.0  ;;  %v316_v29 = vmax.f32 %v296_v23, 0.0  ;;  %v317_v30 = vmax.f32 %v297_v24, 0.0  ;;  %v301_v31 = vmin.f32 %v299_v25, 255.0 }
  0x22   : > { %v307_v32 = vmax.f32 %v292_v26, 0.0  ;;  %v308_v33 = vmax.f32 %v293_v27, 0.0 }
  0x23   : > { %v302_v34 = vmul.f32 0.003921569, %v300_v28  ;;  %v318_v35 = vmin.f32 %v316_v29, 255.0  ;;  %v319_v36 = vmin.f32 %v317_v30, 255.0  ;;  %v303_v37 = vmul.f32 0.003921569, %v301_v31 }
  0x24   : > { %v309_v38 = vmin.f32 %v307_v32, 255.0  ;;  %v310_v39 = vmin.f32 %v308_v33, 255.0 }
  0x25   : > { %305 = vst.msk [vmem:[%s240_s19] sm:$0xff] %vm304_vm0, %v302_v34  ;;  %v320_v40 = vmul.f32 0.003921569, %v318_v35  ;;  %v321_v41 = vmul.f32 0.003921569, %v319_v36  ;;  %306 = vst.msk [vmem:[%s240_s19 + $0x8] sm:$0xff] %vm304_vm0, %v303_v37 }
  0x26   : > { %v311_v42 = vmul.f32 0.003921569, %v309_v38  ;;  %v312_v43 = vmul.f32 0.003921569, %v310_v39 }
  0x27   : > { %473 = vst.msk [vmem:[%s240_s19 + $0x20] sm:$0xff] %vm304_vm0, %v320_v40  ;;  %474 = vst.msk [vmem:[%s240_s19 + $0x28] sm:$0xff] %vm304_vm0, %v321_v41 }
  0x28   : > { %471 = vst.msk [vmem:[%s240_s19 + $0x10] sm:$0xff] %vm304_vm0, %v311_v42  ;;  %472 = vst.msk [vmem:[%s240_s19 + $0x18] sm:$0xff] %vm304_vm0, %v312_v43 }
  0x29   : > { %553 = shalt.err (!%p550_p5)
}
  0x2a   : > { %s554_s28 = scalar_lea.hbm %s717_s26, 768  ;;  %s558_s8 = scalar_lea.hbm %s774_s3, 1536 }
  0x2b   : > { %p555_p6 = scmp.ne.s32.totalorder %s717_s26, %s554_s28  ;;  %p559_p10 = scmp.lt.s32.totalorder %s717_s26, %s774_s3 }
  0x2c   : > { %p560_p11 = scmp.lt.s32.totalorder %s558_s8, %s554_s28 }
  0x2d   : > { %p556_p7 = pnand %p555_p6, %p681_p4 }
  0x2e   : > { %p561_p12 = por %p560_p11, %p559_p10 }
  0x2f   : > { %p557_p9 = pneg %p556_p7 }
  0x31   : > { %p562_p13 = pnand %p561_p12, %p557_p9 }
  0x33   : > { %565 = shalt.err (!%p562_p13)
}
  0x34   : > { %s619_s11 = smov 128   ;;  %s620_s18 = smov 8  }
  0x35   : > { %483 = dma.vmem_to_hbm [thread:$0]  (%p681_p4), %s712_s21, 768, %s717_s26, %s726_s27, %s619_s11, %s619_s11, %s620_s18  }
  0x36 PF: > { %p489_p0 = scmp.ge.s32.totalorder %s616_s17, 2  ;;  %s356_s19 = sand.u32 1, %s596_s12  }
  0x37   : > { %s357_s15 = scalar_lea.sflag [#allocation3], %s356_s19 }
  0x38   : > { %p486_p1 = pnand %p489_p0, %p688_p8 }
  0x3a   : > { %p487_p2 = pneg %p486_p1 }
  0x3c   : > { %591 = dma.done.wait (%p487_p2), %s357_s15, 768  }
  0x3d   : > { %593 = vsyncadd (%p487_p2), %s357_s15, 4294966528  ;;  %s16_s17 = sadd.s32 1, %s616_s17   ;;  %s777_s12 = smov %s600_s13 }
  0x3e   : > { %p13_p3 = scmp.ge.s32.totalorder %s16_s17, 4   ;;  %s778_s13 = smov %s604_s14 }
  0x3f   : > { %s779_s14 = smov %s694_s25  ;;  %s780_s15 = smov %s612_s16 }
  0x40   : > { %s781_s16 = smov %s783_s20  ;;  %15 = sbr.rel (!%p13_p3) target bundleno = 4 (0x4), region = 75 }
  0x45   :  { %362 = vsyncpa [#allocation3], 1 }
  0x46   :  { %364 = vsyncpa [#allocation3 + $0x1], 1 }

</bundles_post_ra>
